<compile_context>
chip_gen: v7x
topology: tpu7x:2x2x1
jax: 0.10.0
libtpu: 0.0.40
codegen_flags: <defaults>
</compile_context>

<pallas_src>
import numpy as np
import jax
import jax.numpy as jnp
from jax.experimental import pallas as pl
from jax.experimental.pallas import tpu as pltpu


# ---------------------------------------------------------------------------
# Kernels
# ---------------------------------------------------------------------------

def _fused_bands_kernel_2op(x_ref, mlow_t_ref, mmid_t_ref,
                            low_ref, mid_ref, high_ref):
    """Slab of TB flattened images vs. two fused (S^2, S^2) band operators.

    high band is reconstructed algebraically: high = x - low - mid
    (valid because the radial masks partition unity).
    """
    x = x_ref[...]                                   # (TB, S2) f32
    low = jnp.dot(x, mlow_t_ref[...], preferred_element_type=jnp.float32)
    mid = jnp.dot(x, mmid_t_ref[...], preferred_element_type=jnp.float32)
    low_ref[...] = low
    mid_ref[...] = mid
    high_ref[...] = x - low - mid                    # VPU, no extra matmul


def _fused_bands_kernel_3op(x_ref, mlow_t_ref, mmid_t_ref, mhigh_t_ref,
                            low_ref, mid_ref, high_ref):
    """Fallback when the masks do not partition unity (e.g. cutoff >= 0.5)."""
    x = x_ref[...]                                   # (TB, S2) f32
    low_ref[...] = jnp.dot(x, mlow_t_ref[...], preferred_element_type=jnp.float32)
    mid_ref[...] = jnp.dot(x, mmid_t_ref[...], preferred_element_type=jnp.float32)
    high_ref[...] = jnp.dot(x, mhigh_t_ref[...], preferred_element_type=jnp.float32)


# ---------------------------------------------------------------------------
# Host-side precompute
# ---------------------------------------------------------------------------

def _make_masks(S, cutoff):
    cr, cc = S // 2, S // 2
    y, x = np.meshgrid(np.arange(S), np.arange(S), indexing="ij")
    dist = np.sqrt((y - cr) ** 2 + (x - cc) ** 2)
    max_radius = np.sqrt((S // 2) ** 2 + (S // 2) ** 2)
    low_cut = max_radius * cutoff
    high_cut = max_radius * (1.0 - cutoff)
    m_low = (dist <= low_cut).astype(np.float32)
    m_high = (dist >= high_cut).astype(np.float32)
    m_mid = ((dist > low_cut) & (dist < high_cut)).astype(np.float32)
    return m_low, m_mid, m_high


def _make_fused_operators(S, cutoff):
    """Build real (S^2, S^2) per-band operators (already transposed for x @ Mt).

    For a row-major flattened image x_flat (length S^2):
        band(x) = real( (Bm (x) Bm) @ diag(mask_flat) @ (A (x) A) ) @ x_flat
    with A = fftshift(F, axis=0), Bm = ifft(ifftshift(I, axis=0), axis=0).
    """
    eye = np.eye(S, dtype=np.float64)
    F = np.fft.fft(eye, axis=0)                              # DFT matrix
    A = np.fft.fftshift(F, axes=0)                           # shifted-FFT:  Y = A X A^T
    Bm = np.fft.ifft(np.fft.ifftshift(eye, axes=0), axis=0)  # inverse side: real(Bm Z Bm^T)

    AkA = np.kron(A, A)                                      # (S^2, S^2) complex
    BkB = np.kron(Bm, Bm)

    m_low, m_mid, m_high = _make_masks(S, cutoff)
    partition = bool(np.all(m_low + m_mid + m_high == 1.0))

    def fused_T(mask):
        M = BkB @ (mask.reshape(-1)[:, None] * AkA)          # BkB @ diag(m) @ AkA
        return np.ascontiguousarray(np.real(M).T.astype(np.float32))

    ops_t = [fused_T(m_low), fused_T(m_mid)]
    if not partition:
        ops_t.append(fused_T(m_high))
    return ops_t, partition


def _round_up(a, m):
    return ((a + m - 1) // m) * m


# ---------------------------------------------------------------------------
# Public entry point
# ---------------------------------------------------------------------------

def two_dimensional_fft_bands(x, cutoff=0.2, tb_max=128):
    """x: (B, C, N) float array. Returns (low, mid, high), each (B, C, N) f32."""
    x = jnp.asarray(x, jnp.float32)
    B, C, N = x.shape
    S = int(np.ceil(np.sqrt(N)))
    S2 = S * S
    BC = B * C

    ops_t, partition = _make_fused_operators(S, cutoff)

    # ---- row tiling: slabs of TB flattened images per grid step -------------
    TB = min(tb_max, _round_up(BC, 8))            # multiple of 8, capped
    BCp = _round_up(BC, TB)                       # grid divides evenly
    grid_rows = BCp // TB
    # Keep >=2 parallel steps when possible so v7x's two TensorCores both work.
    if grid_rows == 1 and TB >= 16 and TB % 16 == 0:
        TB //= 2
        grid_rows = BCp // TB

    # ---- glue in plain JAX: zero-pad N -> S^2, flatten (B,C) and pad rows ----
    x_flat = jnp.zeros((BCp, S2), jnp.float32).at[:BC, :N].set(x.reshape(BC, N))

    img_spec = pl.BlockSpec((TB, S2), lambda i: (i, 0))       # lane-dense (S2 >= 128 typically)
    op_spec = pl.BlockSpec((S2, S2), lambda i: (0, 0))        # constant block -> stays resident

    kernel = _fused_bands_kernel_2op if partition else _fused_bands_kernel_3op
    in_specs = [img_spec] + [op_spec] * len(ops_t)

    grid_spec = pltpu.PrefetchScalarGridSpec(
        num_scalar_prefetch=0,
        grid=(grid_rows,),
        in_specs=in_specs,
        out_specs=[img_spec, img_spec, img_spec],
    )

    out_shape = tuple(jax.ShapeDtypeStruct((BCp, S2), jnp.float32)
                      for _ in range(3))

    low_f, mid_f, high_f = pl.pallas_call(
        kernel,
        out_shape=out_shape,
        grid_spec=grid_spec,
        compiler_params=pltpu.CompilerParams(
            dimension_semantics=("parallel",)),
    )(x_flat, *[jnp.asarray(o) for o in ops_t])

    def unflatten(t):
        return t[:BC].reshape(B, C, S2)[:, :, :N]

    return unflatten(low_f), unflatten(mid_f), unflatten(high_f)


# ---------------------------------------------------------------------------
# Pure-JAX FFT reference (mirrors the PyTorch module exactly)
# ---------------------------------------------------------------------------

def _reference_bands(x, cutoff=0.2):
    x = jnp.asarray(x, jnp.float32)
    B, C, N = x.shape
    S = int(np.ceil(np.sqrt(N)))
    padded = S * S
    xp = jnp.zeros((B, C, padded), jnp.float32).at[:, :, :N].set(x)
    xs = xp.reshape(B, C, S, S)
    fft = jnp.fft.fftshift(jnp.fft.fft2(xs, axes=(-2, -1)), axes=(-2, -1))
    m_low, m_mid, m_high = _make_masks(S, cutoff)

    def band(mask):
        z = fft * mask[None, None]
        out = jnp.fft.ifft2(jnp.fft.ifftshift(z, axes=(-2, -1)),
                            axes=(-2, -1)).real
        return out.reshape(B, C, padded)[:, :, :N]

    return band(m_low), band(m_mid), band(m_high)


if __name__ == "__main__":
    key = jax.random.PRNGKey(0)
    B, C, N = 2, 4, 250          # N pads to S=16 -> 256 (exercises zero-pad path)
    x = jax.random.normal(key, (B, C, N), dtype=jnp.float32)

    low, mid, high = two_dimensional_fft_bands(x, cutoff=0.2)
    jax.block_until_ready((low, mid, high))

    r_low, r_mid, r_high = _reference_bands(x, cutoff=0.2)
    np.testing.assert_allclose(np.asarray(low), np.asarray(r_low), atol=2e-3, rtol=1e-3)
    np.testing.assert_allclose(np.asarray(mid), np.asarray(r_mid), atol=2e-3, rtol=1e-3)
    np.testing.assert_allclose(np.asarray(high), np.asarray(r_high), atol=2e-3, rtol=1e-3)

    print("KERNEL_OK")
</pallas_src>

<mosaic_0001>
module attributes {stable_mosaic.version = 11 : i64} {
  func.func @_fused_bands_kernel_2op(%arg0: i32, %arg1: memref<8x256xf32, #tpu.memory_space<vmem>>, %arg2: memref<256x256xf32, #tpu.memory_space<vmem>>, %arg3: memref<256x256xf32, #tpu.memory_space<vmem>>, %arg4: memref<8x256xf32, #tpu.memory_space<vmem>>, %arg5: memref<8x256xf32, #tpu.memory_space<vmem>>, %arg6: memref<8x256xf32, #tpu.memory_space<vmem>>) attributes {dimension_semantics = [#tpu.dimension_semantics<parallel>], iteration_bounds = array<i64: 1>, scalar_prefetch = 0 : i64, scratch_operands = 0 : i64, tpu.core_type = #tpu.core_type<tc>, window_params = [{transform_indices = @transform_0, window_bounds = array<i64: 8, 256>}, {pipeline_mode = #tpu.pipeline_mode<synchronous>, transform_indices = @transform_1, window_bounds = array<i64: 256, 256>}, {pipeline_mode = #tpu.pipeline_mode<synchronous>, transform_indices = @transform_2, window_bounds = array<i64: 256, 256>}, {transform_indices = @transform_3, window_bounds = array<i64: 8, 256>}, {transform_indices = @transform_4, window_bounds = array<i64: 8, 256>}, {transform_indices = @transform_5, window_bounds = array<i64: 8, 256>}]} {
    %c0 = arith.constant 0 : index
    %c0_0 = arith.constant 0 : index
    %0 = vector.load %arg1[%c0, %c0_0] : memref<8x256xf32, #tpu.memory_space<vmem>>, vector<8x256xf32>
    %c0_1 = arith.constant 0 : index
    %c0_2 = arith.constant 0 : index
    %1 = vector.load %arg2[%c0_1, %c0_2] : memref<256x256xf32, #tpu.memory_space<vmem>>, vector<256x256xf32>
    %cst = arith.constant dense<0.000000e+00> : vector<8x256xf32>
    %2 = tpu.matmul %0, %1, %cst {dimension_numbers = #tpu.dot_dimension_numbers<[1], [0], [0], [1], [0, 0, 1, 1], [], []>} : vector<8x256xf32>, vector<256x256xf32>, vector<8x256xf32> -> vector<8x256xf32>
    %c0_3 = arith.constant 0 : index
    %c0_4 = arith.constant 0 : index
    %3 = vector.load %arg3[%c0_3, %c0_4] : memref<256x256xf32, #tpu.memory_space<vmem>>, vector<256x256xf32>
    %cst_5 = arith.constant dense<0.000000e+00> : vector<8x256xf32>
    %4 = tpu.matmul %0, %3, %cst_5 {dimension_numbers = #tpu.dot_dimension_numbers<[1], [0], [0], [1], [0, 0, 1, 1], [], []>} : vector<8x256xf32>, vector<256x256xf32>, vector<8x256xf32> -> vector<8x256xf32>
    %c0_6 = arith.constant 0 : index
    %c0_7 = arith.constant 0 : index
    %5 = vector.load %arg4[%c0_6, %c0_7] : memref<8x256xf32, #tpu.memory_space<vmem>>, vector<8x256xf32>
    tpu.vector_store %arg4[%c0_6, %c0_7], %2 {strides = array<i32>} : memref<8x256xf32, #tpu.memory_space<vmem>>, vector<8x256xf32>,
    %c0_8 = arith.constant 0 : index
    %c0_9 = arith.constant 0 : index
    %6 = vector.load %arg5[%c0_8, %c0_9] : memref<8x256xf32, #tpu.memory_space<vmem>>, vector<8x256xf32>
    tpu.vector_store %arg5[%c0_8, %c0_9], %4 {strides = array<i32>} : memref<8x256xf32, #tpu.memory_space<vmem>>, vector<8x256xf32>,
    %7 = arith.subf %0, %2 : vector<8x256xf32>
    %8 = arith.subf %7, %4 : vector<8x256xf32>
    %c0_10 = arith.constant 0 : index
    %c0_11 = arith.constant 0 : index
    %9 = vector.load %arg6[%c0_10, %c0_11] : memref<8x256xf32, #tpu.memory_space<vmem>>, vector<8x256xf32>
    tpu.vector_store %arg6[%c0_10, %c0_11], %8 {strides = array<i32>} : memref<8x256xf32, #tpu.memory_space<vmem>>, vector<8x256xf32>,
    return
  }
  func.func @transform_0(%arg0: i32) -> (i32, i32) {
    %c0_i32 = arith.constant 0 : i32
    %c0_i32_0 = arith.constant 0 : i32
    return %arg0, %c0_i32 : i32, i32
  }
  func.func @transform_1(%arg0: i32) -> (i32, i32) {
    %c0_i32 = arith.constant 0 : i32
    %c0_i32_0 = arith.constant 0 : i32
    %c0_i32_1 = arith.constant 0 : i32
    return %c0_i32, %c0_i32_0 : i32, i32
  }
  func.func @transform_2(%arg0: i32) -> (i32, i32) {
    %c0_i32 = arith.constant 0 : i32
    %c0_i32_0 = arith.constant 0 : i32
    %c0_i32_1 = arith.constant 0 : i32
    return %c0_i32, %c0_i32_0 : i32, i32
  }
  func.func @transform_3(%arg0: i32) -> (i32, i32) {
    %c0_i32 = arith.constant 0 : i32
    %c0_i32_0 = arith.constant 0 : i32
    return %arg0, %c0_i32 : i32, i32
  }
  func.func @transform_4(%arg0: i32) -> (i32, i32) {
    %c0_i32 = arith.constant 0 : i32
    %c0_i32_0 = arith.constant 0 : i32
    return %arg0, %c0_i32 : i32, i32
  }
  func.func @transform_5(%arg0: i32) -> (i32, i32) {
    %c0_i32 = arith.constant 0 : i32
    %c0_i32_0 = arith.constant 0 : i32
    return %arg0, %c0_i32 : i32, i32
  }
}

</mosaic_0001>

<bundles_post_ra>
// kernel: tpu_custom_call.1
= control target key start
LH: loop header
LB: loop body
LE: loop exit
PB: predicated region body
PF: predicated region fallthrough
CT: control target
= control target key end

     0   :  { %11 = vsyncpa [#allocation3], 0  ;;  %s794_s0 = inlined_call_operand.hbm [shape: f32[8,256], index: 0, kind: input, shape index: {}]   ;;  %s795_s1 = inlined_call_operand.hbm [shape: f32[256,256], index: 1, kind: input, shape index: {}]   ;;  %s796_s2 = inlined_call_operand.hbm [shape: f32[256,256], index: 2, kind: input, shape index: {}]   ;;  %s797_s3 = inlined_call_operand.hbm [shape: f32[8,256], index: 3, kind: output, shape index: {0}]   ;;  %s798_s4 = inlined_call_operand.hbm [shape: f32[8,256], index: 4, kind: output, shape index: {1}]   ;;  %s799_s5 = inlined_call_operand.hbm [shape: f32[8,256], index: 5, kind: output, shape index: {2}]  }
   0x1   :  { %12 = vsyncpa [#allocation6], 0 }
   0x2   :  { %13 = vsyncpa [#allocation4], 0 }
   0x3   :  { %14 = vsyncpa [#allocation10], 0  ;;  %s659_s18 = smov [#allocation5]   ;;  %s519_s22 = scalar_lea.hbm %s795_s1, 8192 }
   0x4   :  { %s30_s19 = sshll.u32 %s659_s18, 4  ;;  %p520_p0 = scmp.ne.s32.totalorder %s795_s1, %s519_s22  ;;  %s31_s19 = int_to_ptr.vmem [resolvable:$true] %s30_s19 }
   0x5   :  { %p523_p1 = scmp.lt.u32.totalorder %s519_s22, %s795_s1 }
   0x7   :  { %p525_p2 = pnand %p523_p1, %p520_p0 }
   0x9   :  { %528 = shalt.err (!%p525_p2)
}
   0xa   :  { %s529_s27 = scalar_lea.vmem %s31_s19, 8192  ;;  %p534_p4 = scmp.lt.s32.totalorder %s31_s19, %s31_s19 }
   0xb   :  { %p530_p3 = scmp.ne.s32.totalorder %s31_s19, %s529_s27  ;;  %p535_p5 = scmp.lt.s32.totalorder %s529_s27, %s529_s27 }
   0xd   :  { %p536_p6 = por %p535_p5, %p534_p4 }
   0xf   :  { %p537_p7 = pnand %p536_p6, %p530_p3 }
  0x11   :  { %540 = shalt.err (!%p537_p7)
}
  0x12   :  { %s660_s28 = smov 256   ;;  %s661_s29 = smov 16  }
  0x13   :  { %36 = dma.hbm_to_vmem [thread:$0]  %s795_s1, 8192, %s31_s19, [#allocation6], %s660_s28, %s660_s28, %s661_s29  }
  0x14   :  { %s662_s7 = smov [#allocation2]   ;;  %s663_s9 = smov [#allocation7]  }
  0x15   :  { %s21_s8 = sshll.u32 %s662_s7, 4  ;;  %s42_s10 = sshll.u32 %s663_s9, 4  ;;  %s22_s8 = int_to_ptr.vmem [resolvable:$true] %s21_s8  ;;  %s43_s10 = int_to_ptr.vmem [resolvable:$true] %s42_s10 }
  0x16   :  { %s541_s13 = scalar_lea.hbm %s794_s0, 256 }
  0x17   :  { %p542_p8 = scmp.ne.s32.totalorder %s794_s0, %s541_s13  ;;  %p545_p9 = scmp.lt.u32.totalorder %s541_s13, %s794_s0 }
  0x19   :  { %p547_p10 = pnand %p545_p9, %p542_p8 }
  0x1b   :  { %550 = shalt.err (!%p547_p10)
}
  0x1c   :  { %s551_s1 = scalar_lea.vmem %s22_s8, 256  ;;  %p556_p12 = scmp.lt.s32.totalorder %s22_s8, %s22_s8 }
  0x1d   :  { %p552_p11 = scmp.ne.s32.totalorder %s22_s8, %s551_s1  ;;  %p557_p13 = scmp.lt.s32.totalorder %s551_s1, %s551_s1 }
  0x1f   :  { %p558_p0 = por %p557_p13, %p556_p12 }
  0x21   :  { %p559_p1 = pnand %p558_p0, %p552_p11 }
  0x23   :  { %562 = shalt.err (!%p559_p1)
}
  0x24   :  { %24 = dma.hbm_to_vmem [thread:$0]  %s794_s0, 256, %s22_s8, [#allocation3]  }
  0x25   :  { %s563_s22 = scalar_lea.hbm %s796_s2, 8192 }
  0x26   :  { %p564_p2 = scmp.ne.s32.totalorder %s796_s2, %s563_s22  ;;  %p567_p3 = scmp.lt.u32.totalorder %s563_s22, %s796_s2 }
  0x28   :  { %p569_p4 = pnand %p567_p3, %p564_p2 }
  0x2a   :  { %572 = shalt.err (!%p569_p4)
}
  0x2b   :  { %s573_s27 = scalar_lea.vmem %s43_s10, 8192  ;;  %p578_p6 = scmp.lt.s32.totalorder %s43_s10, %s43_s10 }
  0x2c   :  { %p574_p5 = scmp.ne.s32.totalorder %s43_s10, %s573_s27  ;;  %p579_p7 = scmp.lt.s32.totalorder %s573_s27, %s573_s27 }
  0x2e   :  { %p580_p8 = por %p579_p7, %p578_p6 }
  0x30   :  { %p581_p9 = pnand %p580_p8, %p574_p5 }
  0x32   :  { %584 = shalt.err (!%p581_p9)
}
  0x33   :  { %48 = dma.hbm_to_vmem [thread:$0]  %s796_s2, 8192, %s43_s10, [#allocation6], %s660_s28, %s660_s28, %s661_s29  }
  0x34   :  { %651 = dma.done.wait [#allocation3], 256  }
  0x35   :  { %652 = vsyncadd [#allocation3], 4294967040 }
  0x36   :  { %653 = dma.done.wait [#allocation6], 16384  }
  0x37   :  { %654 = vsyncadd [#allocation6], 4294950912  ;;  %v61_v0 = vld [vmem:[#allocation5 + $0x8] sm:$0xff]  ;;  %v63_v1 = vld [vmem:[#allocation5 + $0x18] sm:$0xff]  ;;  %s664_s2 = smov [#allocation8]   ;;  %s665_s29 = smov [#allocation9]  }
  0x38   :  { %v60_v2 = vld [vmem:[#allocation5] sm:$0xff]  ;;  %v383_v3 = vpack.c.bf16 %v63_v1, %v61_v0  ;;  %v62_v4 = vld [vmem:[#allocation5 + $0x10] sm:$0xff]  ;;  %v196_v5 = vld [vmem:[#allocation7 + $0x8] sm:$0xff]  ;;  %s346_s28 = sshll.u32 %s664_s2, 4  ;;  %s356_s6 = sshll.u32 %s665_s29, 4  ;;  %s347_s28 = int_to_ptr.vmem [resolvable:$true] %s346_s28  ;;  %s743_s6 = int_to_ptr.vmem [resolvable:$true] %s356_s6 }
  0x39   :  { %v198_v6 = vld [vmem:[#allocation7 + $0x18] sm:$0xff]  ;;  %v385_v7 = vpack.c.bf16 %v62_v4, %v60_v2  ;;  %v195_v9 = vld [vmem:[#allocation7] sm:$0xff]  ;;  %v197_v10 = vld [vmem:[#allocation7 + $0x10] sm:$0xff]  ;;  %s666_s7 = smov [#allocation11]   ;;  %s585_s9 = scalar_lea.vmem %s347_s28, 256 }
  0x3a   :  { %v447_v8 = vpack.c.bf16 %v198_v6, %v196_v5  ;;  %v65_v11 = vld [vmem:[#allocation5 + $0x28] sm:$0xff]  ;;  %384 = vmatprep.subr.bf16.mxu0 %v383_v3  ;;  %v449_v12 = vpack.c.bf16 %v197_v10, %v195_v9  ;;  %v67_v13 = vld [vmem:[#allocation5 + $0x38] sm:$0xff]  ;;  %v64_v14 = vld [vmem:[#allocation5 + $0x20] sm:$0xff]  ;;  %s366_s8 = sshll.u32 %s666_s7, 4  ;;  %p586_p10 = scmp.ne.s32.totalorder %s347_s28, %s585_s9  ;;  %s746_s8 = int_to_ptr.vmem [resolvable:$true] %s366_s8 }
  0x3b   :  { %v66_v15 = vld [vmem:[#allocation5 + $0x30] sm:$0xff]  ;;  %386 = vmatpush1.bf16.msra.mxu0 %v385_v7  ;;  %v387_v16 = vpack.c.bf16 %v67_v13, %v65_v11  ;;  %v200_v18 = vld [vmem:[#allocation7 + $0x28] sm:$0xff]  ;;  %v202_v19 = vld [vmem:[#allocation7 + $0x38] sm:$0xff]  ;;  %p590_p11 = scmp.lt.s32.totalorder %s347_s28, %s347_s28  ;;  %p591_p12 = scmp.lt.s32.totalorder %s585_s9, %s585_s9 }
  0x3c   :  { %448 = vmatprep.subr.bf16.mxu1 %v447_v8  ;;  %v389_v17 = vpack.c.bf16 %v66_v15, %v64_v14  ;;  %v199_v20 = vld [vmem:[#allocation7 + $0x20] sm:$0xff]  ;;  %v451_v21 = vpack.c.bf16 %v202_v19, %v200_v18  ;;  %v201_v22 = vld [vmem:[#allocation7 + $0x30] sm:$0xff]  ;;  %v69_v23 = vld [vmem:[#allocation5 + $0x48] sm:$0xff] }
  0x3d   :  { %450 = vmatpush1.bf16.msra.mxu1 %v449_v12  ;;  %v71_v24 = vld [vmem:[#allocation5 + $0x58] sm:$0xff]  ;;  %388 = vmatprep.subr.bf16.mxu0 %v387_v16  ;;  %v453_v25 = vpack.c.bf16 %v201_v22, %v199_v20  ;;  %v68_v27 = vld [vmem:[#allocation5 + $0x40] sm:$0xff]  ;;  %v70_v28 = vld [vmem:[#allocation5 + $0x50] sm:$0xff]  ;;  %p592_p13 = por %p591_p12, %p590_p11 }
  0x3e   :  { %v391_v26 = vpack.c.bf16 %v71_v24, %v69_v23  ;;  %v204_v29 = vld [vmem:[#allocation7 + $0x48] sm:$0xff]  ;;  %452 = vmatprep.subr.bf16.mxu1 %v451_v21  ;;  %v206_v30 = vld [vmem:[#allocation7 + $0x58] sm:$0xff]  ;;  %v203_v31 = vld [vmem:[#allocation7 + $0x40] sm:$0xff]  ;;  %v393_v33 = vpack.c.bf16 %v70_v28, %v68_v27 }
  0x3f   :  { %v205_v32 = vld [vmem:[#allocation7 + $0x50] sm:$0xff]  ;;  %390 = vmatpush1.bf16.msra.mxu0 %v389_v17  ;;  %v455_v34 = vpack.c.bf16 %v206_v30, %v204_v29  ;;  %v73_v35 = vld [vmem:[#allocation5 + $0x68] sm:$0xff]  ;;  %v75_v36 = vld [vmem:[#allocation5 + $0x78] sm:$0xff]  ;;  %p593_p0 = pnand %p592_p13, %p586_p10 }
  0x40   :  { %v72_v37 = vld [vmem:[#allocation5 + $0x60] sm:$0xff]  ;;  %392 = vmatprep.subr.bf16.mxu0 %v391_v26  ;;  %v457_v38 = vpack.c.bf16 %v205_v32, %v203_v31  ;;  %v395_v39 = vpack.c.bf16 %v75_v36, %v73_v35  ;;  %v74_v40 = vld [vmem:[#allocation5 + $0x70] sm:$0xff]  ;;  %v208_v41 = vld [vmem:[#allocation7 + $0x68] sm:$0xff] }
  0x41   :  { %454 = vmatpush1.bf16.msra.mxu1 %v453_v25  ;;  %v210_v42 = vld [vmem:[#allocation7 + $0x78] sm:$0xff]  ;;  %v207_v44 = vld [vmem:[#allocation7 + $0x60] sm:$0xff]  ;;  %v209_v45 = vld [vmem:[#allocation7 + $0x70] sm:$0xff]  ;;  %v397_v48 = vpack.c.bf16 %v74_v40, %v72_v37 }
  0x42   :  { %456 = vmatprep.subr.bf16.mxu1 %v455_v34  ;;  %v459_v43 = vpack.c.bf16 %v210_v42, %v208_v41  ;;  %v77_v46 = vld [vmem:[#allocation5 + $0x88] sm:$0xff]  ;;  %v79_v47 = vld [vmem:[#allocation5 + $0x98] sm:$0xff]  ;;  %v461_v51 = vpack.c.bf16 %v209_v45, %v207_v44  ;;  %v76_v53 = vld [vmem:[#allocation5 + $0x80] sm:$0xff] }
  0x43   :  { %394 = vmatpush1.bf16.msra.mxu0 %v393_v33  ;;  %v212_v49 = vld [vmem:[#allocation7 + $0x88] sm:$0xff]  ;;  %v214_v50 = vld [vmem:[#allocation7 + $0x98] sm:$0xff]  ;;  %v399_v52 = vpack.c.bf16 %v79_v47, %v77_v46  ;;  %v78_v54 = vld [vmem:[#allocation5 + $0x90] sm:$0xff] }
  0x44   :  { %396 = vmatprep.subr.bf16.mxu0 %v395_v39  ;;  %v211_v55 = vld [vmem:[#allocation7 + $0x80] sm:$0xff]  ;;  %v463_v56 = vpack.c.bf16 %v214_v50, %v212_v49  ;;  %v213_v57 = vld [vmem:[#allocation7 + $0x90] sm:$0xff]  ;;  %v81_v58 = vld [vmem:[#allocation5 + $0xa8] sm:$0xff]  ;;  %v401_v62 = vpack.c.bf16 %v78_v54, %v76_v53 }
  0x45   :  { %458 = vmatpush1.bf16.msra.mxu1 %v457_v38  ;;  %v83_v59 = vld [vmem:[#allocation5 + $0xb8] sm:$0xff]  ;;  %v216_v60 = vld [vmem:[#allocation7 + $0xa8] sm:$0xff]  ;;  %v465_v63 = vpack.c.bf16 %v213_v57, %v211_v55  ;;  %v80_v1 = vld [vmem:[#allocation5 + $0xa0] sm:$0xff] }
  0x46   :  { %460 = vmatprep.subr.bf16.mxu1 %v459_v43  ;;  %v218_v61 = vld [vmem:[#allocation7 + $0xb8] sm:$0xff]  ;;  %v403_v0 = vpack.c.bf16 %v83_v59, %v81_v58  ;;  %v82_v2 = vld [vmem:[#allocation5 + $0xb0] sm:$0xff]  ;;  %v215_v3 = vld [vmem:[#allocation7 + $0xa0] sm:$0xff] }
  0x47   :  { %398 = vmatpush1.bf16.msra.mxu0 %v397_v48  ;;  %v467_v4 = vpack.c.bf16 %v218_v61, %v216_v60  ;;  %v217_v5 = vld [vmem:[#allocation7 + $0xb0] sm:$0xff]  ;;  %v85_v6 = vld [vmem:[#allocation5 + $0xc8] sm:$0xff]  ;;  %v87_v7 = vld [vmem:[#allocation5 + $0xd8] sm:$0xff]  ;;  %v405_v10 = vpack.c.bf16 %v82_v2, %v80_v1 }
  0x48   :  { %400 = vmatprep.subr.bf16.mxu0 %v399_v52  ;;  %v220_v8 = vld [vmem:[#allocation7 + $0xc8] sm:$0xff]  ;;  %v222_v9 = vld [vmem:[#allocation7 + $0xd8] sm:$0xff]  ;;  %v469_v11 = vpack.c.bf16 %v217_v5, %v215_v3  ;;  %v407_v12 = vpack.c.bf16 %v87_v7, %v85_v6  ;;  %v84_v13 = vld [vmem:[#allocation5 + $0xc0] sm:$0xff] }
  0x49   :  { %462 = vmatpush1.bf16.msra.mxu1 %v461_v51  ;;  %v86_v14 = vld [vmem:[#allocation5 + $0xd0] sm:$0xff]  ;;  %v219_v15 = vld [vmem:[#allocation7 + $0xc0] sm:$0xff]  ;;  %v471_v16 = vpack.c.bf16 %v222_v9, %v220_v8  ;;  %v89_v18 = vld [vmem:[#allocation5 + $0xe8] sm:$0xff] }
  0x4a   :  { %464 = vmatprep.subr.bf16.mxu1 %v463_v56  ;;  %v221_v17 = vld [vmem:[#allocation7 + $0xd0] sm:$0xff]  ;;  %v91_v19 = vld [vmem:[#allocation5 + $0xf8] sm:$0xff]  ;;  %v224_v20 = vld [vmem:[#allocation7 + $0xe8] sm:$0xff]  ;;  %v409_v22 = vpack.c.bf16 %v86_v14, %v84_v13 }
  0x4b   :  { %402 = vmatpush1.bf16.msra.mxu0 %v401_v62  ;;  %v226_v21 = vld [vmem:[#allocation7 + $0xf8] sm:$0xff]  ;;  %v473_v23 = vpack.c.bf16 %v221_v17, %v219_v15  ;;  %v411_v24 = vpack.c.bf16 %v91_v19, %v89_v18  ;;  %v88_v25 = vld [vmem:[#allocation5 + $0xe0] sm:$0xff]  ;;  %v90_v26 = vld [vmem:[#allocation5 + $0xf0] sm:$0xff] }
  0x4c   :  { %404 = vmatprep.subr.bf16.mxu0 %v403_v0  ;;  %v223_v27 = vld [vmem:[#allocation7 + $0xe0] sm:$0xff]  ;;  %v475_v28 = vpack.c.bf16 %v226_v21, %v224_v20  ;;  %v225_v29 = vld [vmem:[#allocation7 + $0xf0] sm:$0xff]  ;;  %v93_v30 = vld [vmem:[#allocation5 + $0x108] sm:$0xff]  ;;  %v413_v34 = vpack.c.bf16 %v90_v26, %v88_v25 }
  0x4d   :  { %466 = vmatpush1.bf16.msra.mxu1 %v465_v63  ;;  %v95_v31 = vld [vmem:[#allocation5 + $0x118] sm:$0xff]  ;;  %v228_v32 = vld [vmem:[#allocation7 + $0x108] sm:$0xff]  ;;  %v477_v35 = vpack.c.bf16 %v225_v29, %v223_v27  ;;  %v92_v37 = vld [vmem:[#allocation5 + $0x100] sm:$0xff] }
  0x4e   :  { %468 = vmatprep.subr.bf16.mxu1 %v467_v4  ;;  %v230_v33 = vld [vmem:[#allocation7 + $0x118] sm:$0xff]  ;;  %v415_v36 = vpack.c.bf16 %v95_v31, %v93_v30  ;;  %v94_v38 = vld [vmem:[#allocation5 + $0x110] sm:$0xff]  ;;  %v227_v39 = vld [vmem:[#allocation7 + $0x100] sm:$0xff] }
  0x4f   :  { %406 = vmatpush1.bf16.msra.mxu0 %v405_v10  ;;  %v479_v40 = vpack.c.bf16 %v230_v33, %v228_v32  ;;  %v229_v41 = vld [vmem:[#allocation7 + $0x110] sm:$0xff]  ;;  %v97_v42 = vld [vmem:[#allocation5 + $0x128] sm:$0xff]  ;;  %v99_v43 = vld [vmem:[#allocation5 + $0x138] sm:$0xff]  ;;  %v417_v46 = vpack.c.bf16 %v94_v38, %v92_v37 }
  0x50   :  { %408 = vmatprep.subr.bf16.mxu0 %v407_v12  ;;  %v232_v44 = vld [vmem:[#allocation7 + $0x128] sm:$0xff]  ;;  %v234_v45 = vld [vmem:[#allocation7 + $0x138] sm:$0xff]  ;;  %v481_v47 = vpack.c.bf16 %v229_v41, %v227_v39  ;;  %v419_v48 = vpack.c.bf16 %v99_v43, %v97_v42  ;;  %v96_v49 = vld [vmem:[#allocation5 + $0x120] sm:$0xff] }
  0x51   :  { %470 = vmatpush1.bf16.msra.mxu1 %v469_v11  ;;  %v98_v50 = vld [vmem:[#allocation5 + $0x130] sm:$0xff]  ;;  %v231_v51 = vld [vmem:[#allocation7 + $0x120] sm:$0xff]  ;;  %v483_v52 = vpack.c.bf16 %v234_v45, %v232_v44  ;;  %v101_v54 = vld [vmem:[#allocation5 + $0x148] sm:$0xff] }
  0x52   :  { %472 = vmatprep.subr.bf16.mxu1 %v471_v16  ;;  %v233_v53 = vld [vmem:[#allocation7 + $0x130] sm:$0xff]  ;;  %v103_v55 = vld [vmem:[#allocation5 + $0x158] sm:$0xff]  ;;  %v236_v56 = vld [vmem:[#allocation7 + $0x148] sm:$0xff]  ;;  %v421_v58 = vpack.c.bf16 %v98_v50, %v96_v49 }
  0x53   :  { %410 = vmatpush1.bf16.msra.mxu0 %v409_v22  ;;  %v238_v57 = vld [vmem:[#allocation7 + $0x158] sm:$0xff]  ;;  %v485_v59 = vpack.c.bf16 %v233_v53, %v231_v51  ;;  %v423_v60 = vpack.c.bf16 %v103_v55, %v101_v54  ;;  %v100_v61 = vld [vmem:[#allocation5 + $0x140] sm:$0xff]  ;;  %v102_v62 = vld [vmem:[#allocation5 + $0x150] sm:$0xff] }
  0x54   :  { %412 = vmatprep.subr.bf16.mxu0 %v411_v24  ;;  %v235_v63 = vld [vmem:[#allocation7 + $0x140] sm:$0xff]  ;;  %v487_v0 = vpack.c.bf16 %v238_v57, %v236_v56  ;;  %v237_v1 = vld [vmem:[#allocation7 + $0x150] sm:$0xff]  ;;  %v105_v2 = vld [vmem:[#allocation5 + $0x168] sm:$0xff]  ;;  %v425_v6 = vpack.c.bf16 %v102_v62, %v100_v61 }
  0x55   :  { %474 = vmatpush1.bf16.msra.mxu1 %v473_v23  ;;  %v107_v3 = vld [vmem:[#allocation5 + $0x178] sm:$0xff]  ;;  %v240_v4 = vld [vmem:[#allocation7 + $0x168] sm:$0xff]  ;;  %v104_v7 = vld [vmem:[#allocation5 + $0x160] sm:$0xff]  ;;  %v489_v8 = vpack.c.bf16 %v237_v1, %v235_v63 }
  0x56   :  { %476 = vmatprep.subr.bf16.mxu1 %v475_v28  ;;  %v242_v5 = vld [vmem:[#allocation7 + $0x178] sm:$0xff]  ;;  %v427_v9 = vpack.c.bf16 %v107_v3, %v105_v2  ;;  %v106_v10 = vld [vmem:[#allocation5 + $0x170] sm:$0xff]  ;;  %v239_v11 = vld [vmem:[#allocation7 + $0x160] sm:$0xff] }
  0x57   :  { %414 = vmatpush1.bf16.msra.mxu0 %v413_v34  ;;  %v241_v12 = vld [vmem:[#allocation7 + $0x170] sm:$0xff]  ;;  %v491_v13 = vpack.c.bf16 %v242_v5, %v240_v4  ;;  %v109_v14 = vld [vmem:[#allocation5 + $0x188] sm:$0xff]  ;;  %v111_v15 = vld [vmem:[#allocation5 + $0x198] sm:$0xff]  ;;  %v429_v19 = vpack.c.bf16 %v106_v10, %v104_v7 }
  0x58   :  { %416 = vmatprep.subr.bf16.mxu0 %v415_v36  ;;  %v739_v16 = vld [vmem:[#allocation2 + $0x8] sm:$0xff]  ;;  %v244_v17 = vld [vmem:[#allocation7 + $0x188] sm:$0xff]  ;;  %v493_v20 = vpack.c.bf16 %v241_v12, %v239_v11  ;;  %v431_v21 = vpack.c.bf16 %v111_v15, %v109_v14  ;;  %v108_v22 = vld [vmem:[#allocation5 + $0x180] sm:$0xff] }
  0x59   :  { %478 = vmatpush1.bf16.msra.mxu1 %v477_v35  ;;  %v246_v18 = vld [vmem:[#allocation7 + $0x198] sm:$0xff]  ;;  %188 = vmatprep.mubr.f32.mxu0 %v739_v16  ;;  %v110_v23 = vld [vmem:[#allocation5 + $0x190] sm:$0xff]  ;;  %v243_v24 = vld [vmem:[#allocation7 + $0x180] sm:$0xff] }
  0x5a   :  { %480 = vmatprep.subr.bf16.mxu1 %v479_v40  ;;  %323 = vmatprep.mubr.f32.mxu1 %v739_v16  ;;  %v495_v25 = vpack.c.bf16 %v246_v18, %v244_v17  ;;  %v245_v26 = vld [vmem:[#allocation7 + $0x190] sm:$0xff]  ;;  %v113_v27 = vld [vmem:[#allocation5 + $0x1a8] sm:$0xff]  ;;  %v115_v28 = vld [vmem:[#allocation5 + $0x1b8] sm:$0xff]  ;;  %v433_v31 = vpack.c.bf16 %v110_v23, %v108_v22 }
  0x5b   :  { %418 = vmatpush1.bf16.msra.mxu0 %v417_v46  ;;  %v248_v29 = vld [vmem:[#allocation7 + $0x1a8] sm:$0xff]  ;;  %v250_v30 = vld [vmem:[#allocation7 + $0x1b8] sm:$0xff]  ;;  %v497_v32 = vpack.c.bf16 %v245_v26, %v243_v24  ;;  %v435_v33 = vpack.c.bf16 %v115_v28, %v113_v27  ;;  %v112_v34 = vld [vmem:[#allocation5 + $0x1a0] sm:$0xff] }
  0x5c   :  { %420 = vmatprep.subr.bf16.mxu0 %v419_v48  ;;  %v114_v35 = vld [vmem:[#allocation5 + $0x1b0] sm:$0xff]  ;;  %v247_v36 = vld [vmem:[#allocation7 + $0x1a0] sm:$0xff]  ;;  %v499_v37 = vpack.c.bf16 %v250_v30, %v248_v29  ;;  %v117_v39 = vld [vmem:[#allocation5 + $0x1c8] sm:$0xff] }
  0x5d   :  { %482 = vmatpush1.bf16.msra.mxu1 %v481_v47  ;;  %v249_v38 = vld [vmem:[#allocation7 + $0x1b0] sm:$0xff]  ;;  %v119_v40 = vld [vmem:[#allocation5 + $0x1d8] sm:$0xff]  ;;  %v252_v41 = vld [vmem:[#allocation7 + $0x1c8] sm:$0xff]  ;;  %v437_v43 = vpack.c.bf16 %v114_v35, %v112_v34 }
  0x5e   :  { %484 = vmatprep.subr.bf16.mxu1 %v483_v52  ;;  %v254_v42 = vld [vmem:[#allocation7 + $0x1d8] sm:$0xff]  ;;  %v501_v44 = vpack.c.bf16 %v249_v38, %v247_v36  ;;  %v439_v45 = vpack.c.bf16 %v119_v40, %v117_v39  ;;  %v116_v46 = vld [vmem:[#allocation5 + $0x1c0] sm:$0xff]  ;;  %v118_v47 = vld [vmem:[#allocation5 + $0x1d0] sm:$0xff] }
  0x5f   :  { %422 = vmatpush1.bf16.msra.mxu0 %v421_v58  ;;  %v251_v48 = vld [vmem:[#allocation7 + $0x1c0] sm:$0xff]  ;;  %v503_v49 = vpack.c.bf16 %v254_v42, %v252_v41  ;;  %v253_v50 = vld [vmem:[#allocation7 + $0x1d0] sm:$0xff]  ;;  %v121_v51 = vld [vmem:[#allocation5 + $0x1e8] sm:$0xff]  ;;  %v441_v55 = vpack.c.bf16 %v118_v47, %v116_v46 }
  0x60   :  { %424 = vmatprep.subr.bf16.mxu0 %v423_v60  ;;  %v123_v52 = vld [vmem:[#allocation5 + $0x1f8] sm:$0xff]  ;;  %v256_v53 = vld [vmem:[#allocation7 + $0x1e8] sm:$0xff]  ;;  %v505_v56 = vpack.c.bf16 %v253_v50, %v251_v48  ;;  %v120_v58 = vld [vmem:[#allocation5 + $0x1e0] sm:$0xff] }
  0x61   :  { %486 = vmatpush1.bf16.msra.mxu1 %v485_v59  ;;  %v258_v54 = vld [vmem:[#allocation7 + $0x1f8] sm:$0xff]  ;;  %v443_v57 = vpack.c.bf16 %v123_v52, %v121_v51  ;;  %v122_v59 = vld [vmem:[#allocation5 + $0x1f0] sm:$0xff]  ;;  %v255_v61 = vld [vmem:[#allocation7 + $0x1e0] sm:$0xff] }
  0x62   :  { %488 = vmatprep.subr.bf16.mxu1 %v487_v0  ;;  %v507_v60 = vpack.c.bf16 %v258_v54, %v256_v53  ;;  %v257_v62 = vld [vmem:[#allocation7 + $0x1f0] sm:$0xff]  ;;  %v445_v63 = vpack.c.bf16 %v122_v59, %v120_v58 }
  0x63   :  { %426 = vmatpush1.bf16.msra.mxu0 %v425_v6  ;;  %v509_v0 = vpack.c.bf16 %v257_v62, %v255_v61  ;;  %v58_v1 = vld [vmem:[#allocation2] sm:$0xff] }
  0x64   :  { %428 = vmatprep.subr.bf16.mxu0 %v427_v9 }
  0x65   :  { %490 = vmatpush1.bf16.msra.mxu1 %v489_v8 }
  0x66   :  { %492 = vmatprep.subr.bf16.mxu1 %v491_v13 }
  0x67   :  { %430 = vmatpush1.bf16.msra.mxu0 %v429_v19 }
  0x68   :  { %432 = vmatprep.subr.bf16.mxu0 %v431_v21 }
  0x69   :  { %494 = vmatpush1.bf16.msra.mxu1 %v493_v20 }
  0x6a   :  { %496 = vmatprep.subr.bf16.mxu1 %v495_v25 }
  0x6b   :  { %434 = vmatpush1.bf16.msra.mxu0 %v433_v31 }
  0x6c   :  { %436 = vmatprep.subr.bf16.mxu0 %v435_v33 }
  0x6d   :  { %498 = vmatpush1.bf16.msra.mxu1 %v497_v32 }
  0x6e   :  { %500 = vmatprep.subr.bf16.mxu1 %v499_v37 }
  0x6f   :  { %438 = vmatpush1.bf16.msra.mxu0 %v437_v43 }
  0x70   :  { %440 = vmatprep.subr.bf16.mxu0 %v439_v45 }
  0x71   :  { %502 = vmatpush1.bf16.msra.mxu1 %v501_v44 }
  0x72   :  { %504 = vmatprep.subr.bf16.mxu1 %v503_v49 }
  0x73   :  { %442 = vmatpush1.bf16.msra.mxu0 %v441_v55 }
  0x74   :  { %444 = vmatprep.subr.bf16.mxu0 %v443_v57 }
  0x75   :  { %506 = vmatpush1.bf16.msra.mxu1 %v505_v56 }
  0x76   :  { %508 = vmatprep.subr.bf16.mxu1 %v507_v60 }
  0x77   :  { %446 = vmatpush1.bf16.msra.mxu0 %v445_v63 }
  0x79   :  { %510 = vmatpush1.bf16.msra.mxu1 %v509_v0 }
  0x7a   :  { %189 = vmatmul.mubr.f32.vlgmr.msra.gmra.mrb[0].mxu0 %v58_v1 }
  0x7c   :  { %324 = vmatmul.mubr.f32.vlgmr.msra.gmra.mrb[0].mxu1 %v58_v1 }
 0x14d   :  { %v190_v2 = vpop.f32.mrb[0].mxu0 }
 0x14e   :  { %330 = vst [vmem:[#allocation8] sm:$0xff] %v190_v2  ;;  %v334_v3 = vsub.f32 %v58_v1, %v190_v2  ;;  %v192_v4 = vpop.f32.mrb[1].mxu0 }
 0x14f   :  { %v325_v5 = vpop.f32.mrb[0].mxu1  ;;  %331 = vst [vmem:[#allocation8 + $0x8] sm:$0xff] %v192_v4  ;;  %v335_v6 = vsub.f32 %v739_v16, %v192_v4 }
 0x150   :  { %332 = vst [vmem:[#allocation9] sm:$0xff] %v325_v5  ;;  %v327_v7 = vpop.f32.mrb[1].mxu1  ;;  %v336_v8 = vsub.f32 %v334_v3, %v325_v5 }
 0x151   :  { %333 = vst [vmem:[#allocation9 + $0x8] sm:$0xff] %v327_v7 }
 0x152   :  { %596 = shalt.err (!%p593_p0)
}
 0x153   :  { %s597_s12 = scalar_lea.hbm %s797_s3, 256 }
 0x154   :  { %p598_p1 = scmp.ne.s32.totalorder %s797_s3, %s597_s12  ;;  %p601_p2 = scmp.lt.u32.totalorder %s597_s12, %s797_s3 }
 0x156   :  { %p603_p3 = pnand %p601_p2, %p598_p1 }
 0x158   :  { %606 = shalt.err (!%p603_p3)
}
 0x159   :  { %349 = dma.vmem_to_hbm [thread:$0]  %s347_s28, 256, %s797_s3, [#allocation4]   ;;  %v337_v9 = vsub.f32 %v335_v6, %v327_v7 }
 0x15a   :  { %s607_s18 = scalar_lea.vmem %s743_s6, 256  ;;  %p612_p5 = scmp.lt.s32.totalorder %s743_s6, %s743_s6 }
 0x15b   :  { %p608_p4 = scmp.ne.s32.totalorder %s743_s6, %s607_s18  ;;  %p613_p6 = scmp.lt.s32.totalorder %s607_s18, %s607_s18 }
 0x15d   :  { %p614_p7 = por %p613_p6, %p612_p5 }
 0x15f   :  { %p615_p8 = pnand %p614_p7, %p608_p4 }
 0x161   :  { %618 = shalt.err (!%p615_p8)
}
 0x162   :  { %s619_s21 = scalar_lea.hbm %s798_s4, 256 }
 0x163   :  { %p620_p9 = scmp.ne.s32.totalorder %s798_s4, %s619_s21  ;;  %p623_p10 = scmp.lt.u32.totalorder %s619_s21, %s798_s4 }
 0x165   :  { %p625_p11 = pnand %p623_p10, %p620_p9 }
 0x167   :  { %628 = shalt.err (!%p625_p11)
}
 0x168   :  { %359 = dma.vmem_to_hbm [thread:$0]  %s743_s6, 256, %s798_s4, [#allocation10]   ;;  %338 = vst [vmem:[#allocation11] sm:$0xff] %v336_v8  ;;  %339 = vst [vmem:[#allocation11 + $0x8] sm:$0xff] %v337_v9 }
 0x169   :  { %s629_s27 = scalar_lea.vmem %s746_s8, 256  ;;  %p634_p13 = scmp.lt.s32.totalorder %s746_s8, %s746_s8 }
 0x16a   :  { %p630_p12 = scmp.ne.s32.totalorder %s746_s8, %s629_s27  ;;  %p635_p0 = scmp.lt.s32.totalorder %s629_s27, %s629_s27 }
 0x16c   :  { %p636_p1 = por %p635_p0, %p634_p13 }
 0x16e   :  { %p637_p2 = pnand %p636_p1, %p630_p12 }
 0x170   :  { %640 = shalt.err (!%p637_p2)
}
 0x171   :  { %s641_s2 = scalar_lea.hbm %s799_s5, 256 }
 0x172   :  { %p642_p3 = scmp.ne.s32.totalorder %s799_s5, %s641_s2  ;;  %p645_p4 = scmp.lt.u32.totalorder %s641_s2, %s799_s5 }
 0x174   :  { %p647_p5 = pnand %p645_p4, %p642_p3 }
 0x176   :  { %650 = shalt.err (!%p647_p5)
}
 0x177   :  { %369 = dma.vmem_to_hbm [thread:$0]  %s746_s8, 256, %s799_s5, [#allocation10]  }
 0x178   :  { %655 = dma.done.wait [#allocation4], 256  }
 0x179   :  { %656 = vsyncadd [#allocation4], 4294967040 }
 0x17a   :  { %657 = dma.done.wait [#allocation10], 512  }
 0x17b   :  { %658 = vsyncadd [#allocation10], 4294966784 }
 0x17c   :  { %379 = vsyncpa [#allocation3], 1 }
 0x17d   :  { %380 = vsyncpa [#allocation6], 1 }
 0x17e   :  { %381 = vsyncpa [#allocation4], 1 }
 0x17f   :  { %382 = vsyncpa [#allocation10], 1 }

</bundles_post_ra>
